<compile_context>
chip_gen: v5e
topology: v5e:2x2
jax: 0.10.0
libtpu: 0.0.40
codegen_flags: <defaults>
</compile_context>

<pallas_src>
import jax
import jax.numpy as jnp
from jax.experimental import pallas as pl
from jax.experimental.pallas import tpu as pltpu


def _round_up(x, m):
    return (x + m - 1) // m * m


# ----------------------------------------------------------------------------
# Kernel 1: LinearClassifier + per-row CrossEntropy on CLS reps (batch-tiled)
# ----------------------------------------------------------------------------
def classifier_ce_kernel(cls_ref, wct_ref, bc_ref, lbl_ref,
                         qreps_ref, scores_ref, rowloss_ref):
    # cls_ref:    (TB, H)      compute dtype (f32 or bf16)
    # wct_ref:    (H, C_pad)   compute dtype, pre-transposed Wc (resident block)
    # bc_ref:     (1, C_pad)   f32, padded classes biased to -1e30 (resident)
    # lbl_ref:    (TB, 1)      int32 labels
    cls = cls_ref[...]
    qreps_ref[...] = cls

    # scores = q_reps @ Wc^T + bc   (no in-kernel transpose; f32 accumulation)
    scores = jnp.dot(cls, wct_ref[...],
                     preferred_element_type=jnp.float32) + bc_ref[...]
    scores_ref[...] = scores

    # Per-row cross entropy, all in f32, all intermediates kept 2-D:
    #   loss_b = logsumexp(scores_b) - scores_b[label_b]
    m = jnp.max(scores, axis=-1, keepdims=True)                        # (TB, 1)
    lse = m + jnp.log(jnp.sum(jnp.exp(scores - m), axis=-1, keepdims=True))
    col = jax.lax.broadcasted_iota(jnp.int32, scores.shape, 1)         # (TB, Cp)
    picked = jnp.sum(jnp.where(col == lbl_ref[...], scores, 0.0),
                     axis=-1, keepdims=True)                           # (TB, 1)
    rowloss_ref[...] = lse - picked


def dense_ncc_forward(hidden, wc, bc, labels, *,
                      compute_dtype=jnp.float32, tile_b=128):
    """hidden: (B,S,H), wc: (C,H), bc: (C,), labels: (B,) int.
    Returns (loss, scores, q_reps) matching DenseOutput fields."""
    B, S, H = hidden.shape
    C = wc.shape[0]

    # --- wrapper glue (all O(B*H) / O(C*H); no pass over the full hidden) ---
    cls = hidden[:, 0, :].astype(compute_dtype)          # CLS pooling: (B, H)

    # Lane-dense classes: pad C up to a multiple of 128. Padded logits get a
    # -1e30 bias so they never influence logsumexp or the picked logit.
    C_pad = _round_up(C, 128)
    wc_t = jnp.zeros((H, C_pad), compute_dtype).at[:, :C].set(
        wc.T.astype(compute_dtype))
    bc_p = jnp.full((1, C_pad), -1e30, jnp.float32).at[0, :C].set(
        bc.astype(jnp.float32))

    # Batch tiling (+ zero padding so the grid divides evenly).
    TB = min(tile_b, _round_up(B, 8))
    B_pad = _round_up(B, TB)
    cls_p = jnp.zeros((B_pad, H), compute_dtype).at[:B].set(cls)
    lbl_p = jnp.zeros((B_pad, 1), jnp.int32).at[:B, 0].set(
        labels.astype(jnp.int32))

    qreps, scores, rowloss = pl.pallas_call(
        classifier_ce_kernel,
        out_shape=(jax.ShapeDtypeStruct((B_pad, H), compute_dtype),
                   jax.ShapeDtypeStruct((B_pad, C_pad), jnp.float32),
                   jax.ShapeDtypeStruct((B_pad, 1), jnp.float32)),
        grid=(B_pad // TB,),
        in_specs=[pl.BlockSpec((TB, H), lambda i: (i, 0)),        # CLS rows (tiled)
                  pl.BlockSpec((H, C_pad), lambda i: (0, 0)),     # Wc^T (resident)
                  pl.BlockSpec((1, C_pad), lambda i: (0, 0)),     # bias (resident)
                  pl.BlockSpec((TB, 1), lambda i: (i, 0))],       # labels (tiled)
        out_specs=(pl.BlockSpec((TB, H), lambda i: (i, 0)),
                   pl.BlockSpec((TB, C_pad), lambda i: (i, 0)),
                   pl.BlockSpec((TB, 1), lambda i: (i, 0))),
        compiler_params=pltpu.CompilerParams(
            dimension_semantics=("parallel",),
            vmem_limit_bytes=48 * 1024 * 1024),   # fits v7x 64 MiB w/ headroom
    )(cls_p, wc_t, bc_p, lbl_p)

    loss = jnp.mean(rowloss[:B, 0])               # mean reduction over true batch
    return loss, scores[:B, :C], qreps[:B]


# ----------------------------------------------------------------------------
# Kernel 2: LinearPooler (Linear -> ReLU -> Linear), row-tiled over B*S
# ----------------------------------------------------------------------------
def pooler_kernel(x_ref, w1t_ref, b1_ref, w2t_ref, b2_ref, out_ref):
    x = x_ref[...]                                                  # (TM, H)
    y = jnp.dot(x, w1t_ref[...],
                preferred_element_type=jnp.float32) + b1_ref[...]
    y = jnp.maximum(y, 0.0).astype(w2t_ref.dtype)                   # ReLU (VPU)
    z = jnp.dot(y, w2t_ref[...],
                preferred_element_type=jnp.float32) + b2_ref[...]
    out_ref[...] = z.astype(out_ref.dtype)


def linear_pooler(hidden, w1, b1, w2, b2, *,
                  compute_dtype=jnp.float32, tile_m=256):
    B, S, H = hidden.shape
    O = w1.shape[0]
    M = B * S
    TM = min(tile_m, _round_up(M, 8))
    M_pad = _round_up(M, TM)

    x_p = jnp.zeros((M_pad, H), compute_dtype).at[:M].set(
        hidden.reshape(M, H).astype(compute_dtype))
    w1_t = w1.T.astype(compute_dtype)                               # (H, O)
    w2_t = w2.T.astype(compute_dtype)                               # (O_in, O_out)
    b1_2 = b1.reshape(1, O).astype(jnp.float32)
    b2_2 = b2.reshape(1, -1).astype(jnp.float32)

    out = pl.pallas_call(
        pooler_kernel,
        out_shape=jax.ShapeDtypeStruct((M_pad, w2_t.shape[1]), hidden.dtype),
        grid=(M_pad // TM,),
        in_specs=[pl.BlockSpec((TM, H), lambda i: (i, 0)),          # rows (tiled)
                  pl.BlockSpec(w1_t.shape, lambda i: (0, 0)),       # W1^T resident
                  pl.BlockSpec(b1_2.shape, lambda i: (0, 0)),
                  pl.BlockSpec(w2_t.shape, lambda i: (0, 0)),       # W2^T resident
                  pl.BlockSpec(b2_2.shape, lambda i: (0, 0))],
        out_specs=pl.BlockSpec((TM, w2_t.shape[1]), lambda i: (i, 0)),
        compiler_params=pltpu.CompilerParams(
            dimension_semantics=("parallel",),
            vmem_limit_bytes=48 * 1024 * 1024),
    )(x_p, w1_t, b1_2, w2_t, b2_2)
    return out[:M].reshape(B, S, -1)


# ----------------------------------------------------------------------------
# Reference (plain JAX) for correctness check
# ----------------------------------------------------------------------------
def reference_forward(hidden, wc, bc, labels):
    q_reps = hidden[:, 0]
    scores = q_reps @ wc.T + bc
    logp = jax.nn.log_softmax(scores, axis=-1)
    loss = -jnp.mean(jnp.take_along_axis(logp, labels[:, None], axis=-1))
    return loss, scores, q_reps


if __name__ == "__main__":
    # Small shapes consistent with the module: batch=8, seq=8, hidden=32, classes=16
    B, S, H, C = 8, 8, 32, 16
    key = jax.random.PRNGKey(0)
    k_h, k_wc, k_bc, k_lbl, k_w1, k_b1, k_w2, k_b2 = jax.random.split(key, 8)

    # "LM last_hidden_state" stand-in (deterministic)
    hidden = jax.random.normal(k_h, (B, S, H), dtype=jnp.float32)

    # LinearClassifier(input_dim=H, output_dim=C) params (PyTorch layout)
    wc = jax.random.normal(k_wc, (C, H), dtype=jnp.float32) * 0.05
    bc = jax.random.normal(k_bc, (C,), dtype=jnp.float32) * 0.05

    # LinearPooler(input_dim=H, output_dim=H) params (Linear, ReLU, Linear)
    w1 = jax.random.normal(k_w1, (H, H), dtype=jnp.float32) * 0.05
    b1 = jax.random.normal(k_b1, (H,), dtype=jnp.float32) * 0.05
    w2 = jax.random.normal(k_w2, (H, H), dtype=jnp.float32) * 0.05
    b2 = jax.random.normal(k_b2, (H,), dtype=jnp.float32) * 0.05

    labels = jax.random.randint(k_lbl, (B,), 0, C, dtype=jnp.int32)

    # ---- forward pass (default config: pooler=None -> CLS pooling), f32 ----
    loss, scores, q_reps = dense_ncc_forward(hidden, wc, bc, labels)
    jax.block_until_ready((loss, scores, q_reps))

    rloss, rscores, rqreps = reference_forward(hidden, wc, bc, labels)
    assert jnp.allclose(loss, rloss, atol=1e-5), (loss, rloss)
    assert jnp.allclose(scores, rscores, atol=1e-5)
    assert jnp.allclose(q_reps, rqreps, atol=1e-6)

    # ---- same kernel with bf16 matmul inputs (v6e/v7x fast path) ----
    loss_bf, scores_bf, qreps_bf = dense_ncc_forward(
        hidden, wc, bc, labels, compute_dtype=jnp.bfloat16)
    jax.block_until_ready((loss_bf, scores_bf, qreps_bf))
    assert jnp.allclose(loss_bf, rloss, atol=5e-2), (loss_bf, rloss)
    assert jnp.allclose(scores_bf, rscores, atol=5e-2)
    assert jnp.allclose(qreps_bf.astype(jnp.float32), rqreps, atol=5e-2)

    # ---- LinearPooler kernel (used when add_pooler=True) ----
    p_reps = linear_pooler(hidden, w1, b1, w2, b2)
    jax.block_until_ready(p_reps)
    rpool = jnp.maximum(hidden @ w1.T + b1, 0.0) @ w2.T + b2
    assert jnp.allclose(p_reps, rpool, atol=1e-5)

    print("KERNEL_OK")
</pallas_src>

<mosaic_0001>
module attributes {stable_mosaic.version = 11 : i64} {
  func.func @classifier_ce_kernel(%arg0: i32, %arg1: memref<8x32xf32, #tpu.memory_space<vmem>>, %arg2: memref<32x128xf32, #tpu.memory_space<vmem>>, %arg3: memref<1x128xf32, #tpu.memory_space<vmem>>, %arg4: memref<8x1xi32, #tpu.memory_space<vmem>>, %arg5: memref<8x32xf32, #tpu.memory_space<vmem>>, %arg6: memref<8x128xf32, #tpu.memory_space<vmem>>, %arg7: memref<8x1xf32, #tpu.memory_space<vmem>>) attributes {dimension_semantics = [#tpu.dimension_semantics<parallel>], iteration_bounds = array<i64: 1>, scalar_prefetch = 0 : i64, scratch_operands = 0 : i64, tpu.core_type = #tpu.core_type<tc>, window_params = [{transform_indices = @transform_0, window_bounds = array<i64: 8, 32>}, {pipeline_mode = #tpu.pipeline_mode<synchronous>, transform_indices = @transform_1, window_bounds = array<i64: 32, 128>}, {pipeline_mode = #tpu.pipeline_mode<synchronous>, transform_indices = @transform_2, window_bounds = array<i64: 1, 128>}, {transform_indices = @transform_3, window_bounds = array<i64: 8, 1>}, {transform_indices = @transform_4, window_bounds = array<i64: 8, 32>}, {transform_indices = @transform_5, window_bounds = array<i64: 8, 128>}, {transform_indices = @transform_6, window_bounds = array<i64: 8, 1>}]} {
    %c0 = arith.constant 0 : index
    %c0_0 = arith.constant 0 : index
    %0 = vector.load %arg1[%c0, %c0_0] : memref<8x32xf32, #tpu.memory_space<vmem>>, vector<8x32xf32>
    %c0_1 = arith.constant 0 : index
    %c0_2 = arith.constant 0 : index
    %1 = vector.load %arg5[%c0_1, %c0_2] : memref<8x32xf32, #tpu.memory_space<vmem>>, vector<8x32xf32>
    tpu.vector_store %arg5[%c0_1, %c0_2], %0 {strides = array<i32>} : memref<8x32xf32, #tpu.memory_space<vmem>>, vector<8x32xf32>,
    %c0_3 = arith.constant 0 : index
    %c0_4 = arith.constant 0 : index
    %2 = vector.load %arg2[%c0_3, %c0_4] : memref<32x128xf32, #tpu.memory_space<vmem>>, vector<32x128xf32>
    %cst = arith.constant dense<0.000000e+00> : vector<8x128xf32>
    %3 = tpu.matmul %0, %2, %cst {dimension_numbers = #tpu.dot_dimension_numbers<[1], [0], [0], [1], [0, 0, 1, 1], [], []>} : vector<8x32xf32>, vector<32x128xf32>, vector<8x128xf32> -> vector<8x128xf32>
    %c0_5 = arith.constant 0 : index
    %c0_6 = arith.constant 0 : index
    %4 = vector.load %arg3[%c0_5, %c0_6] : memref<1x128xf32, #tpu.memory_space<vmem>>, vector<1x128xf32>
    %5 = vector.broadcast %4 : vector<1x128xf32> to vector<8x128xf32>
    %6 = arith.addf %3, %5 : vector<8x128xf32>
    %c0_7 = arith.constant 0 : index
    %c0_8 = arith.constant 0 : index
    %7 = vector.load %arg6[%c0_7, %c0_8] : memref<8x128xf32, #tpu.memory_space<vmem>>, vector<8x128xf32>
    tpu.vector_store %arg6[%c0_7, %c0_8], %6 {strides = array<i32>} : memref<8x128xf32, #tpu.memory_space<vmem>>, vector<8x128xf32>,
    %cst_9 = arith.constant dense<0xFF800000> : vector<8xf32>
    %8 = vector.multi_reduction <maximumf>, %6, %cst_9 [1] : vector<8x128xf32> to vector<8xf32>
    %9 = vector.shape_cast %8 : vector<8xf32> to vector<8x1xf32>
    %10 = vector.broadcast %9 : vector<8x1xf32> to vector<8x128xf32>
    %11 = arith.subf %6, %10 : vector<8x128xf32>
    %12 = math.exp %11 : vector<8x128xf32>
    %cst_10 = arith.constant dense<0.000000e+00> : vector<8xf32>
    %13 = vector.multi_reduction <add>, %12, %cst_10 [1] : vector<8x128xf32> to vector<8xf32>
    %14 = vector.shape_cast %13 : vector<8xf32> to vector<8x1xf32>
    %15 = math.log %14 : vector<8x1xf32>
    %16 = arith.addf %9, %15 : vector<8x1xf32>
    %17 = tpu.iota {dimensions = array<i32: 1>} : vector<8x128xi32>
    %c0_11 = arith.constant 0 : index
    %c0_12 = arith.constant 0 : index
    %18 = vector.load %arg4[%c0_11, %c0_12] : memref<8x1xi32, #tpu.memory_space<vmem>>, vector<8x1xi32>
    %19 = vector.broadcast %18 : vector<8x1xi32> to vector<8x128xi32>
    %20 = arith.cmpi eq, %17, %19 : vector<8x128xi32>
    %cst_13 = arith.constant 0.000000e+00 : f32
    %21 = vector.broadcast %cst_13 : f32 to vector<8x128xf32>
    %22 = arith.select %20, %6, %21 : vector<8x128xi1>, vector<8x128xf32>
    %cst_14 = arith.constant dense<0.000000e+00> : vector<8xf32>
    %23 = vector.multi_reduction <add>, %22, %cst_14 [1] : vector<8x128xf32> to vector<8xf32>
    %24 = vector.shape_cast %23 : vector<8xf32> to vector<8x1xf32>
    %25 = arith.subf %16, %24 : vector<8x1xf32>
    %c0_15 = arith.constant 0 : index
    %c0_16 = arith.constant 0 : index
    %26 = vector.load %arg7[%c0_15, %c0_16] : memref<8x1xf32, #tpu.memory_space<vmem>>, vector<8x1xf32>
    tpu.vector_store %arg7[%c0_15, %c0_16], %25 {strides = array<i32>} : memref<8x1xf32, #tpu.memory_space<vmem>>, vector<8x1xf32>,
    return
  }
  func.func @transform_0(%arg0: i32) -> (i32, i32) {
    %c0_i32 = arith.constant 0 : i32
    %c0_i32_0 = arith.constant 0 : i32
    return %arg0, %c0_i32 : i32, i32
  }
  func.func @transform_1(%arg0: i32) -> (i32, i32) {
    %c0_i32 = arith.constant 0 : i32
    %c0_i32_0 = arith.constant 0 : i32
    %c0_i32_1 = arith.constant 0 : i32
    return %c0_i32, %c0_i32_0 : i32, i32
  }
  func.func @transform_2(%arg0: i32) -> (i32, i32) {
    %c0_i32 = arith.constant 0 : i32
    %c0_i32_0 = arith.constant 0 : i32
    %c0_i32_1 = arith.constant 0 : i32
    return %c0_i32, %c0_i32_0 : i32, i32
  }
  func.func @transform_3(%arg0: i32) -> (i32, i32) {
    %c0_i32 = arith.constant 0 : i32
    %c0_i32_0 = arith.constant 0 : i32
    return %arg0, %c0_i32 : i32, i32
  }
  func.func @transform_4(%arg0: i32) -> (i32, i32) {
    %c0_i32 = arith.constant 0 : i32
    %c0_i32_0 = arith.constant 0 : i32
    return %arg0, %c0_i32 : i32, i32
  }
  func.func @transform_5(%arg0: i32) -> (i32, i32) {
    %c0_i32 = arith.constant 0 : i32
    %c0_i32_0 = arith.constant 0 : i32
    return %arg0, %c0_i32 : i32, i32
  }
  func.func @transform_6(%arg0: i32) -> (i32, i32) {
    %c0_i32 = arith.constant 0 : i32
    %c0_i32_0 = arith.constant 0 : i32
    return %arg0, %c0_i32 : i32, i32
  }
}

</mosaic_0001>

<bundles_post_ra>
// kernel: tpu_custom_call.1
= control target key start
LH: loop header
LB: loop body
LE: loop exit
PB: predicated region body
PF: predicated region fallthrough
CT: control target
= control target key end

     0   :  { %12 = vsyncpa [#allocation3], 0  ;;  %s286_s0 = inlined_call_operand.vmem [shape: f32[8,32], index: 0, kind: input, shape index: {}]   ;;  %s287_s1 = inlined_call_operand.hbm [shape: f32[32,128], index: 1, kind: input, shape index: {}]   ;;  %s288_s2 = inlined_call_operand.vmem [shape: f32[1,128], index: 2, kind: input, shape index: {}]   ;;  %s289_s3 = inlined_call_operand.vmem [shape: s32[8,1], index: 3, kind: input, shape index: {}]   ;;  %s290_s4 = inlined_call_operand.hbm [shape: f32[8,32], index: 4, kind: output, shape index: {0}]   ;;  %s291_s5 = inlined_call_operand.hbm [shape: f32[8,128], index: 5, kind: output, shape index: {1}]   ;;  %s292_s6 = inlined_call_operand.vmem [shape: f32[8,1], index: 6, kind: output, shape index: {2}]  }
   0x1   :  { %13 = vsyncpa [#allocation4], 0 }
   0x2   :  { %14 = vsyncpa [#allocation7], 0  ;;  %s21_s23 = sshll.u32 %s287_s1, 4  ;;  %s224_s24 = smov [#allocation2]   ;;  %s22_s23 = int_to_ptr.hbm [resolvable:$true] %s21_s23 }
   0x3   :  { %s23_s25 = sshll.u32 %s224_s24, 4  ;;  %s225_s26 = smov 128   ;;  %s24_s25 = int_to_ptr.vmem [resolvable:$true] %s23_s25 }
   0x4   :  { %s226_s27 = smov 8  }
   0x5   :  { %29 = dma.hbm_to_vmem [thread:$0]  %s22_s23, 512, %s24_s25, [#allocation3], %s225_s26, %s225_s26, %s226_s27  }
   0x6   :  { %218 = dma.done.wait [#allocation3], 512  }
   0x7   :  { %219 = vsyncadd [#allocation3], 4294966784  ;;  %v44_v0 = vld [vmem:[#allocation2 + $0x18] sm:$0xff]  ;;  %v43_v1 = vld [vmem:[#allocation2 + $0x10] sm:$0xff]  ;;  %vm39_vm0 = vcmask 261120   ;;  %v227_v5 = vmov 0   ;;  %v83_v14 = vlaneseq }
   0x8   :  { %64 = vmatpush.msra.mxu0 %v44_v0  ;;  %v38_v2 = vld [vmem:[%s286_s0] sm:$0xff]  ;;  %v42_v3 = vld [vmem:[#allocation2 + $0x8] sm:$0xff]  ;;  %140 = vset.pattern.permute.xlu0 %v227_v5  ;;  %s228_s8 = smov [#allocation5]   ;;  %s229_s12 = smov [#allocation6]   ;;  %vm94_vm2 = vcmask 7168  }
   0x9   :  { %40 = vst.msk [vmem:[#allocation5] sm:$0xff] %vm39_vm0, %v38_v2  ;;  %v41_v4 = vld [vmem:[#allocation2] sm:$0xff]  ;;  %s101_s9 = sshll.u32 %s228_s8, 4  ;;  %s112_s13 = sshll.u32 %s229_s12, 4  ;;  %v84_v15 = vand.u32 127, %v83_v14  ;;  %s102_s9 = int_to_ptr.vmem [resolvable:$true] %s101_s9  ;;  %s113_s13 = int_to_ptr.vmem [resolvable:$true] %s112_s13 }
   0xa   :  { %65 = vmatpush.msra.mxu0 %v43_v1  ;;  %v141_v6 = vld [vmem:[%s288_s2] ss:$0 sm:$0xff]  ;;  %s103_s2 = sshll.u32 %s290_s4, 4  ;;  %s114_s15 = sshll.u32 %s291_s5, 4  ;;  %s104_s2 = int_to_ptr.hbm [resolvable:$true] %s103_s2  ;;  %s115_s15 = int_to_ptr.hbm [resolvable:$true] %s114_s15 }
   0xb   :  { %v85_v9 = vld [vmem:[%s289_s3] sm:$0xff]  ;;  %106 = dma.vmem_to_hbm [thread:$0]  %s102_s9, 128, %s104_s2, [#allocation4]  }
   0xc   :  { %66 = vmatpush.msra.mxu0 %v42_v3 }
   0xe   :  { %67 = vmatpush.msra.mxu0 %v41_v4 }
   0xf   :  { %133 = vmatmul.msk.f32.vlgmr.msra.gmra.mxu0 %vm39_vm0, %v38_v2 }
  0x8c   :  { %v69_v7 = vpop.f32.mrf.mxu0 }
  0x8d   :  { %v70_v8 = vadd.f32 %v141_v6, %v69_v7 }
  0x8f   :  { %72 = vst [vmem:[#allocation6] sm:$0xff] %v70_v8  ;;  %73 = vmax.xlane.f32.xlu0 %v70_v8 }
  0x90   :  { %117 = dma.vmem_to_hbm [thread:$0]  %s113_s13, 128, %s115_s15, [#allocation7]  }
  0xa3   :  { %87 = vperm.xlu0 %140, %v85_v9  }
 0x102   :  { %v74_v10 = vpop.xlane.xlu0 %73 }
 0x103   :  { %v75_v11 = vsub.f32 %v70_v8, %v74_v10 }
 0x105   :  { %v76_v12 = vmul.f32 1.442695, %v75_v11 }
 0x107   :  { %142 = vpow2.f32 %v76_v12 }
 0x10d   :  { %v143_v13 = vpop.eup %142 }
 0x10e   :  { %78 = vadd.xlane.f32.xlu1 %v143_v13 }
 0x115   :  { %v88_v16 = vpop.permute.xlu0 %87 }
 0x116   :  { %vm89_vm1 = vcmp.eq.s32.totalorder %v84_v15, %v88_v16 }
 0x117   :  { %v90_v17 = vsel %vm89_vm1, %v70_v8, 0.0 }
 0x118   :  { %91 = vadd.xlane.f32.xlu1 %v90_v17 }
 0x181   :  { %v79_v18 = vpop.xlane.xlu1 %78 }
 0x182   :  { %144 = vlog2.f32 %v79_v18 }
 0x188   :  { %v145_v19 = vpop.eup %144 }
 0x189   :  { %v81_v20 = vmul.f32 0.6931472, %v145_v19 }
 0x18b   :  { %v82_v21 = vadd.f32 %v81_v20, %v74_v10  ;;  %v92_v22 = vpop.xlane.xlu1 %91 }
 0x18d   :  { %v93_v23 = vsub.f32 %v82_v21, %v92_v22 }
 0x18f   :  { %95 = vst.msk [vmem:[%s292_s6] sm:$0xff] %vm94_vm2, %v93_v23 }
 0x190   :  { %220 = dma.done.wait [#allocation4], 128  }
 0x191   :  { %221 = vsyncadd [#allocation4], 4294967168 }
 0x192   :  { %222 = dma.done.wait [#allocation7], 128  }
 0x193   :  { %223 = vsyncadd [#allocation7], 4294967168 }
 0x194   :  { %130 = vsyncpa [#allocation3], 1 }
 0x195   :  { %131 = vsyncpa [#allocation4], 1 }
 0x196   :  { %132 = vsyncpa [#allocation7], 1 }

</bundles_post_ra>
